<compile_context>
chip_gen: v7x
topology: tpu7x:2x2x1
jax: 0.10.0
libtpu: 0.0.40
codegen_flags: <defaults>
</compile_context>

<pallas_src>
import functools

import jax
import jax.numpy as jnp
from jax import lax
from jax.experimental import pallas as pl
from jax.experimental.pallas import tpu as pltpu


# ----------------------------- kernels --------------------------------------


def _rnn_layer_body(x_ref, w_ref, gb_ref, out_ref, *, eps: float):
    x = x_ref[...]            # (B, Din)         bf16 (or f32)
    w = w_ref[...]            # (Din, TILE)      bf16 (or f32), pre-transposed weight tile
    gamma = gb_ref[0:1, :]    # (1, TILE)        f32
    beta = gb_ref[1:2, :]     # (1, TILE)        f32

    # ---- Linear (bias omitted: training-mode BN subtracts the per-feature batch mean
    #      right after, which cancels the bias exactly). Native (B,Din)@(Din,TILE)
    #      contraction on the MXU, f32 accumulation.
    y = jnp.dot(x, w, preferred_element_type=jnp.float32)        # (B, TILE) f32

    # ---- BatchNorm1d (training-mode batch stats, biased variance), all f32, fused affine.
    #      Centered two-pass form kept on purpose: the one-pass E[y^2]-mean^2 form can go
    #      slightly negative and NaN under rsqrt when var ~ eps.
    mean = jnp.mean(y, axis=0, keepdims=True)                    # (1, TILE)
    centered = y - mean
    var = jnp.mean(centered * centered, axis=0, keepdims=True)   # (1, TILE)
    scale = gamma * lax.rsqrt(var + eps)                         # EUP rsqrt, tiny tile

    # ---- ReLU; lane-dense full-tile store.
    out_ref[...] = jnp.maximum(centered * scale + beta, 0.0).astype(out_ref.dtype)


def rnn_layer_kernel(x_ref, w_ref, gb_ref, out_ref, *, eps: float):
    _rnn_layer_body(x_ref, w_ref, gb_ref, out_ref, eps=eps)


def rnn_layer_fold_kernel(x_ref, w_ref, gb_ref, buf_ref, out_ref, *, eps: float):
    # buf_ref is the HBM slab aliased to the output; its tail already holds x and is
    # never touched by the grid, so the kernel only writes the activation columns.
    del buf_ref
    _rnn_layer_body(x_ref, w_ref, gb_ref, out_ref, eps=eps)


# ----------------------------- sizing helpers --------------------------------


def _vmem_limit_bytes() -> int:
    """Scoped-VMEM limit for this kernel, derived from the chip (v5e/v6e: 128 MiB
    physical -> ~96 MiB; v7x: 64 MiB per TC -> ~48 MiB). Conservative fallback if the
    query is unavailable."""
    cap = 64 << 20   # conservative default = v7x per-TC VMEM
    try:
        cap = int(pltpu.get_tpu_info().vmem_capacity_bytes)
    except Exception:
        pass
    return max(min(cap * 3 // 4, 100 << 20), 16 << 20)


def _pick_tile_dout(dout: int, din: int, batch: int, budget_bytes: int,
                    *, itemsize: int = 2) -> int:
    """Output-feature tile size.

    Per grid step the budget counts: double-buffered weight tile (matmul dtype),
    double-buffered f32 output tile, ~4 live (B, TILE) f32 intermediates, the
    double-buffered packed gamma/beta tile, plus x counted at 2 buffers (worst case if the
    single-buffer request is not honoured)."""
    per_col = (2 * itemsize * din      # weight tile, double-buffered
               + 2 * 4 * batch         # f32 output tile, double-buffered
               + 4 * 4 * batch         # f32 intermediates (y / centered / bn / relu)
               + 2 * 2 * 4)            # packed gamma/beta tile, double-buffered
    fixed = 2 * itemsize * batch * din + (1 << 20)   # x (2 bufs worst case) + slack
    avail = budget_bytes - fixed
    max_tile = 128
    if avail > 0:
        max_tile = max(128, (avail // per_col) // 128 * 128)

    if dout % 128 != 0:
        # Not lane-aligned: a single full-extent block is always legal; fall back to
        # 128-multiple tiles (masked tail block) only if VMEM forces it.
        return dout if (dout <= 128 or dout <= max_tile) else max_tile

    # Dout is a 128-multiple: pick the largest 128-multiple tile that (a) fits the VMEM
    # budget, (b) divides Dout exactly (keeps the in-place concat write window clean),
    # and (c) leaves >= 2 grid steps whenever Dout >= 256, so v7x megacore gets both
    # TensorCores working and the weight-stream pipeline has something to overlap.
    upper = min(max_tile, dout // 2 if dout >= 256 else dout)
    upper = max(128, (upper // 128) * 128)
    for cand in range(upper, 127, -128):
        if dout % cand == 0:
            return cand
    return 128


# ----------------------------- wrapper ---------------------------------------


def rnn_layer(x, w, b, gamma, beta, *, eps: float = 1e-5, matmul_dtype=jnp.bfloat16):
    """Forward of RNN_layer: concat([ReLU(BN(Linear(x))), x], dim=1).

    x: (B, Din); w: (Dout, Din) (PyTorch nn.Linear layout); b/gamma/beta: (Dout,).
    `b` is accepted for API parity but unused: training-mode BatchNorm1d's batch-mean
    subtraction cancels the Linear bias exactly.
    """
    x = jnp.asarray(x, jnp.float32)
    w = jnp.asarray(w, jnp.float32)
    del b  # exactly cancelled by BN mean subtraction (dead compute + dead DMA)
    batch, din = x.shape
    dout = w.shape[0]

    # bf16 feed to the MXU (halves W/x HBM + VMEM bytes); accumulation & BN stay f32.
    # TODO(synk): for quantized deployments use int8 weights on v5e/v6e and fp8 on v7x
    # (no integer MXU path there); kept bf16 here for drop-in numerical fidelity.
    x_mx = x.astype(matmul_dtype)
    # One-time transpose to (Din, Dout): loop-invariant across RNN timesteps, and avoids a
    # per-tile XLU transpose of the weight inside the grid loop.
    w_t = w.T.astype(matmul_dtype)

    # gamma/beta packed into one (2, Dout) operand -> single DMA / BlockSpec, f32.
    gb = jnp.stack([jnp.asarray(gamma, jnp.float32),
                    jnp.asarray(beta, jnp.float32)], axis=0)

    vmem_limit = _vmem_limit_bytes()
    itemsize = jnp.dtype(matmul_dtype).itemsize
    tile = _pick_tile_dout(dout, din, batch, vmem_limit * 85 // 100, itemsize=itemsize)
    grid = (pl.cdiv(dout, tile),)

    fold_concat = (dout % 128 == 0) and (dout % tile == 0)
    dtot = dout + din

    cost = pl.CostEstimate(
        flops=2 * batch * dout * din,
        transcendentals=dout,                    # one rsqrt per output feature
        bytes_accessed=(x_mx.size * itemsize + w_t.size * itemsize + gb.size * 4
                        + batch * (dtot if fold_concat else dout) * 4),
    )
    compiler_params = pltpu.CompilerParams(
        dimension_semantics=("parallel",),       # feature tiles independent (BN per-feature)
        vmem_limit_bytes=int(vmem_limit),
    )

    w_spec = pl.BlockSpec((din, tile), lambda j: (0, j))      # weight tile streams in
    gb_spec = pl.BlockSpec((2, tile), lambda j: (0, j))       # packed gamma/beta tile
    out_spec = pl.BlockSpec((batch, tile), lambda j: (0, j))  # lane-dense activation tile
    # TODO(synk): on v7x, bump w_spec to pipeline_mode=pl.Buffered(3) if profiling shows
    # exposed DMA (tiny per-tile compute vs 3.2 TB/s HBM).
    # TODO(synk): if a large-batch variant ever makes (B, Din) too big for VMEM, switch the
    # BN stats to a two-pass accumulator kernel with a batch grid axis marked "arbitrary"
    # instead of shrinking Dout tiles.

    def run(x_spec):
        if fold_concat:
            # Write activations straight into the left Dout columns of the final
            # (B, Dout+Din) slab; x already sits in the tail (single jnp.pad, no HBM
            # round-trip of y through a wrapper concat).
            buf = jnp.pad(x, ((0, 0), (dout, 0)))
            return pl.pallas_call(
                functools.partial(rnn_layer_fold_kernel, eps=eps),
                out_shape=jax.ShapeDtypeStruct((batch, dtot), jnp.float32),
                grid_spec=pltpu.PrefetchScalarGridSpec(
                    num_scalar_prefetch=0,
                    grid=grid,
                    in_specs=[x_spec, w_spec, gb_spec,
                              pl.BlockSpec(memory_space=pl.ANY)],
                    out_specs=out_spec,
                ),
                input_output_aliases={3: 0},   # output aliases buf; untouched tail keeps x
                compiler_params=compiler_params,
                cost_estimate=cost,
            )(x_mx, w_t, gb, buf)

        y = pl.pallas_call(
            functools.partial(rnn_layer_kernel, eps=eps),
            out_shape=jax.ShapeDtypeStruct((batch, dout), jnp.float32),
            grid_spec=pltpu.PrefetchScalarGridSpec(
                num_scalar_prefetch=0,
                grid=grid,
                in_specs=[x_spec, w_spec, gb_spec],
                out_specs=out_spec,
            ),
            compiler_params=compiler_params,
            cost_estimate=cost,
        )(x_mx, w_t, gb)
        return jnp.concatenate([y, x], axis=1)

    try:
        # x's block index never changes across the grid: single-buffer it to reclaim VMEM
        # for the bandwidth-critical weight tiles.
        return run(pl.BlockSpec((batch, din), lambda j: (0, 0),
                                pipeline_mode=pl.Buffered(1)))
    except Exception:
        # Builds that reject Buffered(1): fall back to default double-buffering of x.
        return run(pl.BlockSpec((batch, din), lambda j: (0, 0)))


# ----------------------------- reference & demo ------------------------------


def rnn_layer_ref(x, w, b, gamma, beta, eps=1e-5, matmul_dtype=None):
    """Pure-JAX reference mirroring the PyTorch forward (training-mode BN, bias included).
    `matmul_dtype` quantizes the Linear inputs exactly the way the kernel feeds the MXU."""
    if matmul_dtype is not None:
        xq = x.astype(matmul_dtype).astype(jnp.float32)
        wq = w.astype(matmul_dtype).astype(jnp.float32)
    else:
        xq, wq = x, w
    y = xq @ wq.T + b
    mean = jnp.mean(y, axis=0, keepdims=True)
    var = jnp.mean((y - mean) ** 2, axis=0, keepdims=True)
    y = (y - mean) / jnp.sqrt(var + eps) * gamma + beta
    y = jnp.maximum(y, 0.0)
    return jnp.concatenate([y, x], axis=1)


if __name__ == "__main__":
    def run_case(batch, din, dout, default_affine):
        key = jax.random.PRNGKey(0)
        kx, kw, kb, kg, kbe = jax.random.split(key, 5)
        x = jax.random.normal(kx, (batch, din), dtype=jnp.float32)

        # Deterministic parameter init (PyTorch Linear-style uniform bound).
        bound = 1.0 / (din ** 0.5)
        w = jax.random.uniform(kw, (dout, din), jnp.float32, -bound, bound)
        b = jax.random.uniform(kb, (dout,), jnp.float32, -bound, bound)
        if default_affine:
            gamma = jnp.ones((dout,), jnp.float32)     # BatchNorm1d default weight
            beta = jnp.zeros((dout,), jnp.float32)     # BatchNorm1d default bias
        else:
            gamma = jax.random.uniform(kg, (dout,), jnp.float32, 0.5, 1.5)
            beta = 0.1 * jax.random.normal(kbe, (dout,), jnp.float32)

        out = jax.block_until_ready(rnn_layer(x, w, b, gamma, beta))
        assert out.shape == (batch, dout + din), out.shape

        # Tight check vs a reference fed the same bf16-quantized Linear inputs as the MXU
        # (accumulation and all BN math in f32 on both sides). Bias is analytically
        # cancelled by BN; residual diff is fp rounding / accumulation order only.
        ref_q = rnn_layer_ref(x, w, b, gamma, beta, matmul_dtype=jnp.bfloat16)
        assert jnp.allclose(out, ref_q, atol=1e-4, rtol=1e-4), "mismatch vs matched-precision ref"

        # Coarse sanity check vs the full-f32 PyTorch-equivalent reference; bf16 input
        # quantization only perturbs the normalized activations at the ~1e-2 level.
        ref_f32 = rnn_layer_ref(x, w, b, gamma, beta)
        assert jnp.allclose(out, ref_f32, atol=1e-1, rtol=5e-2), "mismatch vs f32 reference"

    # Tiny, non-128-aligned Dout: single full-extent block, wrapper-side concat path.
    run_case(batch=8, din=16, dout=32, default_affine=True)
    # Lane-aligned Dout: 2-step feature grid (megacore-splittable) + folded in-place concat.
    run_case(batch=8, din=128, dout=256, default_affine=False)

    print("KERNEL_OK")
</pallas_src>

<mosaic_0001>
module attributes {stable_mosaic.version = 11 : i64} {
  func.func @rnn_layer_kernel(%arg0: i32, %arg1: memref<8x16xbf16, #tpu.memory_space<vmem>>, %arg2: memref<16x32xbf16, #tpu.memory_space<vmem>>, %arg3: memref<2x32xf32, #tpu.memory_space<vmem>>, %arg4: memref<8x32xf32, #tpu.memory_space<vmem>>) attributes {dimension_semantics = [#tpu.dimension_semantics<parallel>], iteration_bounds = array<i64: 1>, scalar_prefetch = 0 : i64, scratch_operands = 0 : i64, tpu.core_type = #tpu.core_type<tc>, window_params = [{pipeline_mode = #tpu.pipeline_mode<synchronous>, transform_indices = @transform_0, window_bounds = array<i64: 8, 16>}, {transform_indices = @transform_1, window_bounds = array<i64: 16, 32>}, {transform_indices = @transform_2, window_bounds = array<i64: 2, 32>}, {transform_indices = @transform_3, window_bounds = array<i64: 8, 32>}]} {
    %c0 = arith.constant 0 : index
    %c0_0 = arith.constant 0 : index
    %0 = vector.load %arg1[%c0, %c0_0] : memref<8x16xbf16, #tpu.memory_space<vmem>>, vector<8x16xbf16>
    %c0_1 = arith.constant 0 : index
    %c0_2 = arith.constant 0 : index
    %1 = vector.load %arg2[%c0_1, %c0_2] : memref<16x32xbf16, #tpu.memory_space<vmem>>, vector<16x32xbf16>
    %c0_3 = arith.constant 0 : index
    %c0_4 = arith.constant 0 : index
    %2 = vector.load %arg3[%c0_3, %c0_4] : memref<2x32xf32, #tpu.memory_space<vmem>>, vector<1x32xf32>
    %c1 = arith.constant 1 : index
    %c0_5 = arith.constant 0 : index
    %3 = vector.load %arg3[%c1, %c0_5] : memref<2x32xf32, #tpu.memory_space<vmem>>, vector<1x32xf32>
    %cst = arith.constant dense<0.000000e+00> : vector<8x32xf32>
    %4 = tpu.matmul %0, %1, %cst {dimension_numbers = #tpu.dot_dimension_numbers<[1], [0], [0], [1], [0, 0, 1, 1], [], []>} : vector<8x16xbf16>, vector<16x32xbf16>, vector<8x32xf32> -> vector<8x32xf32>
    %cst_6 = arith.constant dense<0.000000e+00> : vector<32xf32>
    %5 = vector.multi_reduction <add>, %4, %cst_6 [0] : vector<8x32xf32> to vector<32xf32>
    %6 = vector.shape_cast %5 : vector<32xf32> to vector<1x32xf32>
    %cst_7 = arith.constant 8.000000e+00 : f32
    %7 = vector.broadcast %cst_7 : f32 to vector<1x32xf32>
    %8 = arith.divf %6, %7 : vector<1x32xf32>
    %9 = vector.broadcast %8 : vector<1x32xf32> to vector<8x32xf32>
    %10 = arith.subf %4, %9 : vector<8x32xf32>
    %11 = arith.mulf %10, %10 : vector<8x32xf32>
    %cst_8 = arith.constant dense<0.000000e+00> : vector<32xf32>
    %12 = vector.multi_reduction <add>, %11, %cst_8 [0] : vector<8x32xf32> to vector<32xf32>
    %13 = vector.shape_cast %12 : vector<32xf32> to vector<1x32xf32>
    %cst_9 = arith.constant 8.000000e+00 : f32
    %14 = vector.broadcast %cst_9 : f32 to vector<1x32xf32>
    %15 = arith.divf %13, %14 : vector<1x32xf32>
    %cst_10 = arith.constant 9.99999974E-6 : f32
    %16 = vector.broadcast %cst_10 : f32 to vector<1x32xf32>
    %17 = arith.addf %15, %16 : vector<1x32xf32>
    %18 = math.rsqrt %17 : vector<1x32xf32>
    %19 = arith.mulf %2, %18 : vector<1x32xf32>
    %20 = vector.broadcast %19 : vector<1x32xf32> to vector<8x32xf32>
    %21 = arith.mulf %10, %20 : vector<8x32xf32>
    %22 = vector.broadcast %3 : vector<1x32xf32> to vector<8x32xf32>
    %23 = arith.addf %21, %22 : vector<8x32xf32>
    %cst_11 = arith.constant 0.000000e+00 : f32
    %24 = vector.broadcast %cst_11 : f32 to vector<8x32xf32>
    %25 = arith.maximumf %23, %24 : vector<8x32xf32>
    %c0_12 = arith.constant 0 : index
    %c0_13 = arith.constant 0 : index
    %26 = vector.load %arg4[%c0_12, %c0_13] : memref<8x32xf32, #tpu.memory_space<vmem>>, vector<8x32xf32>
    tpu.vector_store %arg4[%c0_12, %c0_13], %25 {strides = array<i32>} : memref<8x32xf32, #tpu.memory_space<vmem>>, vector<8x32xf32>,
    return
  }
  func.func @transform_0(%arg0: i32) -> (i32, i32) {
    %c0_i32 = arith.constant 0 : i32
    %c0_i32_0 = arith.constant 0 : i32
    %c0_i32_1 = arith.constant 0 : i32
    return %c0_i32, %c0_i32_0 : i32, i32
  }
  func.func @transform_1(%arg0: i32) -> (i32, i32) {
    %c0_i32 = arith.constant 0 : i32
    %c0_i32_0 = arith.constant 0 : i32
    return %c0_i32, %arg0 : i32, i32
  }
  func.func @transform_2(%arg0: i32) -> (i32, i32) {
    %c0_i32 = arith.constant 0 : i32
    %c0_i32_0 = arith.constant 0 : i32
    return %c0_i32, %arg0 : i32, i32
  }
  func.func @transform_3(%arg0: i32) -> (i32, i32) {
    %c0_i32 = arith.constant 0 : i32
    %c0_i32_0 = arith.constant 0 : i32
    return %c0_i32, %arg0 : i32, i32
  }
}

module attributes {stable_mosaic.version = 11 : i64} {
  func.func @rnn_layer_kernel(%arg0: i32, %arg1: memref<8x16xbf16, #tpu.memory_space<vmem>>, %arg2: memref<16x32xbf16, #tpu.memory_space<vmem>>, %arg3: memref<2x32xf32, #tpu.memory_space<vmem>>, %arg4: memref<8x32xf32, #tpu.memory_space<vmem>>) attributes {dimension_semantics = [#tpu.dimension_semantics<parallel>], iteration_bounds = array<i64: 1>, scalar_prefetch = 0 : i64, scratch_operands = 0 : i64, tpu.core_type = #tpu.core_type<tc>, window_params = [{pipeline_mode = #tpu.pipeline_mode<synchronous>, transform_indices = @transform_0, window_bounds = array<i64: 8, 16>}, {transform_indices = @transform_1, window_bounds = array<i64: 16, 32>}, {transform_indices = @transform_2, window_bounds = array<i64: 2, 32>}, {transform_indices = @transform_3, window_bounds = array<i64: 8, 32>}]} {
    %c0 = arith.constant 0 : index
    %c0_0 = arith.constant 0 : index
    %0 = vector.load %arg1[%c0, %c0_0] : memref<8x16xbf16, #tpu.memory_space<vmem>>, vector<8x16xbf16>
    %c0_1 = arith.constant 0 : index
    %c0_2 = arith.constant 0 : index
    %1 = vector.load %arg2[%c0_1, %c0_2] : memref<16x32xbf16, #tpu.memory_space<vmem>>, vector<16x32xbf16>
    %c0_3 = arith.constant 0 : index
    %c0_4 = arith.constant 0 : index
    %2 = vector.load %arg3[%c0_3, %c0_4] : memref<2x32xf32, #tpu.memory_space<vmem>>, vector<1x32xf32>
    %c1 = arith.constant 1 : index
    %c0_5 = arith.constant 0 : index
    %3 = vector.load %arg3[%c1, %c0_5] : memref<2x32xf32, #tpu.memory_space<vmem>>, vector<1x32xf32>
    %cst = arith.constant dense<0.000000e+00> : vector<8x32xf32>
    %4 = tpu.matmul %0, %1, %cst {dimension_numbers = #tpu.dot_dimension_numbers<[1], [0], [0], [1], [0, 0, 1, 1], [], []>} : vector<8x16xbf16>, vector<16x32xbf16>, vector<8x32xf32> -> vector<8x32xf32>
    %cst_6 = arith.constant dense<0.000000e+00> : vector<32xf32>
    %5 = vector.multi_reduction <add>, %4, %cst_6 [0] : vector<8x32xf32> to vector<32xf32>
    %6 = vector.shape_cast %5 : vector<32xf32> to vector<1x32xf32>
    %cst_7 = arith.constant 8.000000e+00 : f32
    %7 = vector.broadcast %cst_7 : f32 to vector<1x32xf32>
    %8 = arith.divf %6, %7 : vector<1x32xf32>
    %9 = vector.broadcast %8 : vector<1x32xf32> to vector<8x32xf32>
    %10 = arith.subf %4, %9 : vector<8x32xf32>
    %11 = arith.mulf %10, %10 : vector<8x32xf32>
    %cst_8 = arith.constant dense<0.000000e+00> : vector<32xf32>
    %12 = vector.multi_reduction <add>, %11, %cst_8 [0] : vector<8x32xf32> to vector<32xf32>
    %13 = vector.shape_cast %12 : vector<32xf32> to vector<1x32xf32>
    %cst_9 = arith.constant 8.000000e+00 : f32
    %14 = vector.broadcast %cst_9 : f32 to vector<1x32xf32>
    %15 = arith.divf %13, %14 : vector<1x32xf32>
    %cst_10 = arith.constant 9.99999974E-6 : f32
    %16 = vector.broadcast %cst_10 : f32 to vector<1x32xf32>
    %17 = arith.addf %15, %16 : vector<1x32xf32>
    %18 = math.rsqrt %17 : vector<1x32xf32>
    %19 = arith.mulf %2, %18 : vector<1x32xf32>
    %20 = vector.broadcast %19 : vector<1x32xf32> to vector<8x32xf32>
    %21 = arith.mulf %10, %20 : vector<8x32xf32>
    %22 = vector.broadcast %3 : vector<1x32xf32> to vector<8x32xf32>
    %23 = arith.addf %21, %22 : vector<8x32xf32>
    %cst_11 = arith.constant 0.000000e+00 : f32
    %24 = vector.broadcast %cst_11 : f32 to vector<8x32xf32>
    %25 = arith.maximumf %23, %24 : vector<8x32xf32>
    %c0_12 = arith.constant 0 : index
    %c0_13 = arith.constant 0 : index
    %26 = vector.load %arg4[%c0_12, %c0_13] : memref<8x32xf32, #tpu.memory_space<vmem>>, vector<8x32xf32>
    tpu.vector_store %arg4[%c0_12, %c0_13], %25 {strides = array<i32>} : memref<8x32xf32, #tpu.memory_space<vmem>>, vector<8x32xf32>,
    return
  }
  func.func @transform_0(%arg0: i32) -> (i32, i32) {
    %c0_i32 = arith.constant 0 : i32
    %c0_i32_0 = arith.constant 0 : i32
    %c0_i32_1 = arith.constant 0 : i32
    return %c0_i32, %c0_i32_0 : i32, i32
  }
  func.func @transform_1(%arg0: i32) -> (i32, i32) {
    %c0_i32 = arith.constant 0 : i32
    %c0_i32_0 = arith.constant 0 : i32
    return %c0_i32, %arg0 : i32, i32
  }
  func.func @transform_2(%arg0: i32) -> (i32, i32) {
    %c0_i32 = arith.constant 0 : i32
    %c0_i32_0 = arith.constant 0 : i32
    return %c0_i32, %arg0 : i32, i32
  }
  func.func @transform_3(%arg0: i32) -> (i32, i32) {
    %c0_i32 = arith.constant 0 : i32
    %c0_i32_0 = arith.constant 0 : i32
    return %c0_i32, %arg0 : i32, i32
  }
}

</mosaic_0001>

<bundles_post_ra>
// kernel: tpu_custom_call.1
= control target key start
LH: loop header
LB: loop body
LE: loop exit
PB: predicated region body
PF: predicated region fallthrough
CT: control target
= control target key end

     0   :  { %8 = vsyncpa [#allocation3], 0  ;;  %s320_s0 = inlined_call_operand.hbm [shape: bf16[8,16], index: 0, kind: input, shape index: {}]   ;;  %s321_s1 = inlined_call_operand.hbm [shape: bf16[16,32], index: 1, kind: input, shape index: {}]   ;;  %s322_s2 = inlined_call_operand.vmem [shape: f32[2,32], index: 2, kind: input, shape index: {}]   ;;  %s323_s3 = inlined_call_operand.hbm [shape: f32[8,32], index: 3, kind: output, shape index: {}]  }
   0x1   :  { %9 = vsyncpa [#allocation6], 0 }
   0x2   :  { %10 = vsyncpa [#allocation4], 0  ;;  %s241_s12 = smov [#allocation2]   ;;  %s242_s14 = smov [#allocation5]  }
   0x3   :  { %s17_s13 = sshll.u32 %s241_s12, 4  ;;  %s26_s15 = sshll.u32 %s242_s14, 4  ;;  %s18_s13 = int_to_ptr.vmem [resolvable:$true] %s17_s13  ;;  %s268_s15 = int_to_ptr.vmem [resolvable:$true] %s26_s15 }
   0x4   :  { %s169_s18 = scalar_lea.hbm %s320_s0, 64 }
   0x5   :  { %p170_p0 = scmp.ne.s32.totalorder %s320_s0, %s169_s18  ;;  %p173_p1 = scmp.lt.u32.totalorder %s169_s18, %s320_s0 }
   0x7   :  { %p175_p2 = pnand %p173_p1, %p170_p0 }
   0x9   :  { %178 = shalt.err (!%p175_p2)
}
   0xa   :  { %s179_s23 = scalar_lea.vmem %s18_s13, 64  ;;  %p184_p4 = scmp.lt.s32.totalorder %s18_s13, %s18_s13 }
   0xb   :  { %p180_p3 = scmp.ne.s32.totalorder %s18_s13, %s179_s23  ;;  %p185_p5 = scmp.lt.s32.totalorder %s179_s23, %s179_s23 }
   0xd   :  { %p186_p6 = por %p185_p5, %p184_p4 }
   0xf   :  { %p187_p7 = pnand %p186_p6, %p180_p3 }
  0x11   :  { %190 = shalt.err (!%p187_p7)
}
  0x12   :  { %20 = dma.hbm_to_vmem [thread:$0]  %s320_s0, 64, %s18_s13, [#allocation3]  }
  0x13   :  { %s191_s28 = scalar_lea.hbm %s321_s1, 128 }
  0x14   :  { %p192_p8 = scmp.ne.s32.totalorder %s321_s1, %s191_s28  ;;  %p195_p9 = scmp.lt.u32.totalorder %s191_s28, %s321_s1 }
  0x16   :  { %p197_p10 = pnand %p195_p9, %p192_p8 }
  0x18   :  { %200 = shalt.err (!%p197_p10)
}
  0x19   :  { %s201_s6 = scalar_lea.vmem %s268_s15, 128  ;;  %p206_p12 = scmp.lt.s32.totalorder %s268_s15, %s268_s15 }
  0x1a   :  { %p202_p11 = scmp.ne.s32.totalorder %s268_s15, %s201_s6  ;;  %p207_p13 = scmp.lt.s32.totalorder %s201_s6, %s201_s6 }
  0x1c   :  { %p208_p0 = por %p207_p13, %p206_p12 }
  0x1e   :  { %p209_p1 = pnand %p208_p0, %p202_p11 }
  0x20   :  { %212 = shalt.err (!%p209_p1)
}
  0x21   :  { %s243_s0 = smov 64   ;;  %s244_s7 = smov 4  }
  0x22   :  { %32 = dma.hbm_to_vmem [thread:$0]  %s321_s1, 128, %s268_s15, [#allocation6], %s243_s0, %s243_s0, %s244_s7  }
  0x23   :  { %235 = dma.done.wait [#allocation3], 64  }
  0x24   :  { %236 = vsyncadd [#allocation3], 4294967232 }
  0x25   :  { %237 = dma.done.wait [#allocation6], 128  }
  0x26   :  { %238 = vsyncadd [#allocation6], 4294967168  ;;  %v245_v0 = vmov 0.0   ;;  %vm246_vm0 = vmmov 0   ;;  %v166_v1 = vld [vmem:[#allocation5] sm:$0xff]   ;;  %vm53_vm1 = vcmask 130048   ;;  %v120_v26 = vlaneseq }
  0x27   :  { %153 = vmatprep.subr.bf16.mxu0 %v245_v0  ;;  %155 = vmatprep.mubr.msk.bf16.mxu0 %vm246_vm0, %v245_v0  ;;  %v42_v2 = vld [vmem:[#allocation2] sm:$0xf]  ;;  %vm97_vm2 = vcmask 261120   ;;  %s247_s13 = smov [#allocation7]  }
  0x28   :  { %154 = vmatpush3.bf16.msra.mxu0 %v166_v1  ;;  %v121_v27 = vshrl.u32 %v120_v26, 7  ;;  %v45_v28 = vld [vmem:[%s322_s2] sm:$0x1]  ;;  %v150_v33 = vld [vmem:[%s322_s2 + $0x1] ss:$0 sm:$0xff]  ;;  %s138_s14 = sshll.u32 %s247_s13, 4  ;;  %s139_s14 = int_to_ptr.vmem [resolvable:$true] %s138_s14 }
  0x29   :  { %s213_s15 = scalar_lea.vmem %s139_s14, 128  ;;  %p218_p3 = scmp.lt.s32.totalorder %s139_s14, %s139_s14 }
  0x2a   :  { %v122_v29 = vsub.s32 0, %v121_v27  ;;  %p214_p2 = scmp.ne.s32.totalorder %s139_s14, %s213_s15  ;;  %p219_p4 = scmp.lt.s32.totalorder %s213_s15, %s213_s15 }
  0x2b   :  { %156 = vmatmul.mubr.msk.bf16.vlgmr.msra.gmra.mrb[0].mxu0 %vm53_vm1, %v42_v2 }
  0x2c   :  { %p220_p5 = por %p219_p4, %p218_p3 }
  0x2e   :  { %p221_p6 = pnand %p220_p5, %p214_p2 }
  0xfe   :  { %v91_v3 = vpop.f32.mrb[0].mxu0 }
  0xff   :  { %v98_v4 = vsel %vm97_vm2, %v91_v3, 0.0  ;;  %v157_v5 = vpop.f32.mrb[1].mxu0 }
 0x100   :  { %v99_v6 = vrot.slane %v98_v4, 4  ;;  %v94_v7 = vpop.f32.mrb[2].mxu0 }
 0x101   :  { %v158_v8 = vpop.f32.mrb[3].mxu0 }
 0x102   :  { %v100_v9 = vadd.f32 %v99_v6, %v98_v4 }
 0x104   :  { %v101_v10 = vrot.slane %v100_v9, 2 }
 0x106   :  { %v102_v11 = vadd.f32 %v101_v10, %v100_v9 }
 0x108   :  { %v103_v12 = vrot.slane %v102_v11, 1 }
 0x10a   :  { %v104_v13 = vadd.f32 %v103_v12, %v102_v11 }
 0x10c   :  { %v106_v14 = vmul.f32 0.125, %v104_v13 }
 0x10e   :  { %v107_v15 = vsub.f32 %v91_v3, %v106_v14 }
 0x110   :  { %v108_v16 = vmul.f32 %v107_v15, %v107_v15 }
 0x112   :  { %v109_v17 = vsel %vm97_vm2, %v108_v16, 0.0 }
 0x113   :  { %v110_v18 = vrot.slane %v109_v17, 4 }
 0x115   :  { %v111_v19 = vadd.f32 %v110_v18, %v109_v17 }
 0x117   :  { %v112_v20 = vrot.slane %v111_v19, 2 }
 0x119   :  { %v113_v21 = vadd.f32 %v112_v20, %v111_v19 }
 0x11b   :  { %v114_v22 = vrot.slane %v113_v21, 1 }
 0x11d   :  { %v115_v23 = vadd.f32 %v114_v22, %v113_v21 }
 0x11f   :  { %v116_v24 = vmul.f32 0.125, %v115_v23 }
 0x121   :  { %v117_v25 = vadd.f32 1e-05, %v116_v24 }
 0x123   :  { %167 = vrsqrt.f32 %v117_v25 }
 0x12d   :  { %v168_v30 = vpop.eup %167 }
 0x12e   :  { %v119_v31 = vmul.f32 %v168_v30, %v45_v28 }
 0x130   :  { %v123_v32 = vrot.slane %v119_v31, %v122_v29 }
 0x132   :  { %v124_v34 = vmul.f32 %v123_v32, %v107_v15 }
 0x134   :  { %v129_v35 = vadd.f32 %v150_v33, %v124_v34 }
 0x136   :  { %v130_v36 = vmax.f32 %v129_v35, 0.0 }
 0x138   :  { %131 = vst.msk [vmem:[#allocation7] sm:$0xff] %vm97_vm2, %v130_v36 }
 0x139   :  { %224 = shalt.err (!%p221_p6)
}
 0x13a   :  { %s225_s18 = scalar_lea.hbm %s323_s3, 128 }
 0x13b   :  { %p226_p7 = scmp.ne.s32.totalorder %s323_s3, %s225_s18  ;;  %p229_p8 = scmp.lt.u32.totalorder %s225_s18, %s323_s3 }
 0x13d   :  { %p231_p9 = pnand %p229_p8, %p226_p7 }
 0x13f   :  { %234 = shalt.err (!%p231_p9)
}
 0x140   :  { %141 = dma.vmem_to_hbm [thread:$0]  %s139_s14, 128, %s323_s3, [#allocation4]  }
 0x141   :  { %239 = dma.done.wait [#allocation4], 128  }
 0x142   :  { %240 = vsyncadd [#allocation4], 4294967168 }
 0x143   :  { %145 = vsyncpa [#allocation3], 1 }
 0x144   :  { %146 = vsyncpa [#allocation6], 1 }
 0x145   :  { %147 = vsyncpa [#allocation4], 1 }

// kernel: tpu_custom_call.1
= control target key start
LH: loop header
LB: loop body
LE: loop exit
PB: predicated region body
PF: predicated region fallthrough
CT: control target
= control target key end

     0   :  { %8 = vsyncpa [#allocation3], 0  ;;  %s320_s0 = inlined_call_operand.hbm [shape: bf16[8,16], index: 0, kind: input, shape index: {}]   ;;  %s321_s1 = inlined_call_operand.hbm [shape: bf16[16,32], index: 1, kind: input, shape index: {}]   ;;  %s322_s2 = inlined_call_operand.vmem [shape: f32[2,32], index: 2, kind: input, shape index: {}]   ;;  %s323_s3 = inlined_call_operand.hbm [shape: f32[8,32], index: 3, kind: output, shape index: {}]  }
   0x1   :  { %9 = vsyncpa [#allocation6], 0 }
   0x2   :  { %10 = vsyncpa [#allocation4], 0  ;;  %s241_s12 = smov [#allocation2]   ;;  %s242_s14 = smov [#allocation5]  }
   0x3   :  { %s17_s13 = sshll.u32 %s241_s12, 4  ;;  %s26_s15 = sshll.u32 %s242_s14, 4  ;;  %s18_s13 = int_to_ptr.vmem [resolvable:$true] %s17_s13  ;;  %s268_s15 = int_to_ptr.vmem [resolvable:$true] %s26_s15 }
   0x4   :  { %s169_s18 = scalar_lea.hbm %s320_s0, 64 }
   0x5   :  { %p170_p0 = scmp.ne.s32.totalorder %s320_s0, %s169_s18  ;;  %p173_p1 = scmp.lt.u32.totalorder %s169_s18, %s320_s0 }
   0x7   :  { %p175_p2 = pnand %p173_p1, %p170_p0 }
   0x9   :  { %178 = shalt.err (!%p175_p2)
}
   0xa   :  { %s179_s23 = scalar_lea.vmem %s18_s13, 64  ;;  %p184_p4 = scmp.lt.s32.totalorder %s18_s13, %s18_s13 }
   0xb   :  { %p180_p3 = scmp.ne.s32.totalorder %s18_s13, %s179_s23  ;;  %p185_p5 = scmp.lt.s32.totalorder %s179_s23, %s179_s23 }
   0xd   :  { %p186_p6 = por %p185_p5, %p184_p4 }
   0xf   :  { %p187_p7 = pnand %p186_p6, %p180_p3 }
  0x11   :  { %190 = shalt.err (!%p187_p7)
}
  0x12   :  { %20 = dma.hbm_to_vmem [thread:$0]  %s320_s0, 64, %s18_s13, [#allocation3]  }
  0x13   :  { %s191_s28 = scalar_lea.hbm %s321_s1, 128 }
  0x14   :  { %p192_p8 = scmp.ne.s32.totalorder %s321_s1, %s191_s28  ;;  %p195_p9 = scmp.lt.u32.totalorder %s191_s28, %s321_s1 }
  0x16   :  { %p197_p10 = pnand %p195_p9, %p192_p8 }
  0x18   :  { %200 = shalt.err (!%p197_p10)
}
  0x19   :  { %s201_s6 = scalar_lea.vmem %s268_s15, 128  ;;  %p206_p12 = scmp.lt.s32.totalorder %s268_s15, %s268_s15 }
  0x1a   :  { %p202_p11 = scmp.ne.s32.totalorder %s268_s15, %s201_s6  ;;  %p207_p13 = scmp.lt.s32.totalorder %s201_s6, %s201_s6 }
  0x1c   :  { %p208_p0 = por %p207_p13, %p206_p12 }
  0x1e   :  { %p209_p1 = pnand %p208_p0, %p202_p11 }
  0x20   :  { %212 = shalt.err (!%p209_p1)
}
  0x21   :  { %s243_s0 = smov 64   ;;  %s244_s7 = smov 4  }
  0x22   :  { %32 = dma.hbm_to_vmem [thread:$0]  %s321_s1, 128, %s268_s15, [#allocation6], %s243_s0, %s243_s0, %s244_s7  }
  0x23   :  { %235 = dma.done.wait [#allocation3], 64  }
  0x24   :  { %236 = vsyncadd [#allocation3], 4294967232 }
  0x25   :  { %237 = dma.done.wait [#allocation6], 128  }
  0x26   :  { %238 = vsyncadd [#allocation6], 4294967168  ;;  %v245_v0 = vmov 0.0   ;;  %vm246_vm0 = vmmov 0   ;;  %v166_v1 = vld [vmem:[#allocation5] sm:$0xff]   ;;  %vm53_vm1 = vcmask 130048   ;;  %v120_v26 = vlaneseq }
  0x27   :  { %153 = vmatprep.subr.bf16.mxu0 %v245_v0  ;;  %155 = vmatprep.mubr.msk.bf16.mxu0 %vm246_vm0, %v245_v0  ;;  %v42_v2 = vld [vmem:[#allocation2] sm:$0xf]  ;;  %vm97_vm2 = vcmask 261120   ;;  %s247_s13 = smov [#allocation7]  }
  0x28   :  { %154 = vmatpush3.bf16.msra.mxu0 %v166_v1  ;;  %v121_v27 = vshrl.u32 %v120_v26, 7  ;;  %v45_v28 = vld [vmem:[%s322_s2] sm:$0x1]  ;;  %v150_v33 = vld [vmem:[%s322_s2 + $0x1] ss:$0 sm:$0xff]  ;;  %s138_s14 = sshll.u32 %s247_s13, 4  ;;  %s139_s14 = int_to_ptr.vmem [resolvable:$true] %s138_s14 }
  0x29   :  { %s213_s15 = scalar_lea.vmem %s139_s14, 128  ;;  %p218_p3 = scmp.lt.s32.totalorder %s139_s14, %s139_s14 }
  0x2a   :  { %v122_v29 = vsub.s32 0, %v121_v27  ;;  %p214_p2 = scmp.ne.s32.totalorder %s139_s14, %s213_s15  ;;  %p219_p4 = scmp.lt.s32.totalorder %s213_s15, %s213_s15 }
  0x2b   :  { %156 = vmatmul.mubr.msk.bf16.vlgmr.msra.gmra.mrb[0].mxu0 %vm53_vm1, %v42_v2 }
  0x2c   :  { %p220_p5 = por %p219_p4, %p218_p3 }
  0x2e   :  { %p221_p6 = pnand %p220_p5, %p214_p2 }
  0xfe   :  { %v91_v3 = vpop.f32.mrb[0].mxu0 }
  0xff   :  { %v98_v4 = vsel %vm97_vm2, %v91_v3, 0.0  ;;  %v157_v5 = vpop.f32.mrb[1].mxu0 }
 0x100   :  { %v99_v6 = vrot.slane %v98_v4, 4  ;;  %v94_v7 = vpop.f32.mrb[2].mxu0 }
 0x101   :  { %v158_v8 = vpop.f32.mrb[3].mxu0 }
 0x102   :  { %v100_v9 = vadd.f32 %v99_v6, %v98_v4 }
 0x104   :  { %v101_v10 = vrot.slane %v100_v9, 2 }
 0x106   :  { %v102_v11 = vadd.f32 %v101_v10, %v100_v9 }
 0x108   :  { %v103_v12 = vrot.slane %v102_v11, 1 }
 0x10a   :  { %v104_v13 = vadd.f32 %v103_v12, %v102_v11 }
 0x10c   :  { %v106_v14 = vmul.f32 0.125, %v104_v13 }
 0x10e   :  { %v107_v15 = vsub.f32 %v91_v3, %v106_v14 }
 0x110   :  { %v108_v16 = vmul.f32 %v107_v15, %v107_v15 }
 0x112   :  { %v109_v17 = vsel %vm97_vm2, %v108_v16, 0.0 }
 0x113   :  { %v110_v18 = vrot.slane %v109_v17, 4 }
 0x115   :  { %v111_v19 = vadd.f32 %v110_v18, %v109_v17 }
 0x117   :  { %v112_v20 = vrot.slane %v111_v19, 2 }
 0x119   :  { %v113_v21 = vadd.f32 %v112_v20, %v111_v19 }
 0x11b   :  { %v114_v22 = vrot.slane %v113_v21, 1 }
 0x11d   :  { %v115_v23 = vadd.f32 %v114_v22, %v113_v21 }
 0x11f   :  { %v116_v24 = vmul.f32 0.125, %v115_v23 }
 0x121   :  { %v117_v25 = vadd.f32 1e-05, %v116_v24 }
 0x123   :  { %167 = vrsqrt.f32 %v117_v25 }
 0x12d   :  { %v168_v30 = vpop.eup %167 }
 0x12e   :  { %v119_v31 = vmul.f32 %v168_v30, %v45_v28 }
 0x130   :  { %v123_v32 = vrot.slane %v119_v31, %v122_v29 }
 0x132   :  { %v124_v34 = vmul.f32 %v123_v32, %v107_v15 }
 0x134   :  { %v129_v35 = vadd.f32 %v150_v33, %v124_v34 }
 0x136   :  { %v130_v36 = vmax.f32 %v129_v35, 0.0 }
 0x138   :  { %131 = vst.msk [vmem:[#allocation7] sm:$0xff] %vm97_vm2, %v130_v36 }
 0x139   :  { %224 = shalt.err (!%p221_p6)
}
 0x13a   :  { %s225_s18 = scalar_lea.hbm %s323_s3, 128 }
 0x13b   :  { %p226_p7 = scmp.ne.s32.totalorder %s323_s3, %s225_s18  ;;  %p229_p8 = scmp.lt.u32.totalorder %s225_s18, %s323_s3 }
 0x13d   :  { %p231_p9 = pnand %p229_p8, %p226_p7 }
 0x13f   :  { %234 = shalt.err (!%p231_p9)
}
 0x140   :  { %141 = dma.vmem_to_hbm [thread:$0]  %s139_s14, 128, %s323_s3, [#allocation4]  }
 0x141   :  { %239 = dma.done.wait [#allocation4], 128  }
 0x142   :  { %240 = vsyncadd [#allocation4], 4294967168 }
 0x143   :  { %145 = vsyncpa [#allocation3], 1 }
 0x144   :  { %146 = vsyncpa [#allocation6], 1 }
 0x145   :  { %147 = vsyncpa [#allocation4], 1 }

</bundles_post_ra>
